<compile_context>
chip_gen: v7x
topology: tpu7x:2x2x1
jax: 0.10.0
libtpu: 0.0.40
codegen_flags: <defaults>
</compile_context>

<pallas_src>
import functools
import math

import jax
import jax.numpy as jnp
from jax.experimental import pallas as pl
from jax.experimental.pallas import tpu as pltpu

LANE = 128     # vreg lane width   -> last-dim alignment
SUBLANE = 8    # vreg sublane width -> second-minor alignment


def _round_up(x, m):
    return ((x + m - 1) // m) * m


def flash_self_attention_kernel(hq_ref, hkv_ref, wq_ref, wkv_ref, o_ref,
                                q_scr, m_scr, l_scr, acc_scr,
                                *, n_real, tk, mask_kv):
    """One (batch-tile, query-tile) block; kv tiles stream along grid axis 2."""
    kv_step = pl.program_id(2)
    tb, tq, f_pad = hq_ref.shape
    in_dtype = hq_ref.dtype

    # ---- init + Q projection, once per (batch, query) tile -------------------
    @pl.when(kv_step == 0)
    def _init():
        hq2 = hq_ref[...].reshape(tb * tq, f_pad)        # layout-free: tq % 8 == 0
        q = jnp.dot(hq2, wq_ref[...], preferred_element_type=jnp.float32)
        q_scr[...] = q.astype(in_dtype).reshape(tb, tq, f_pad)  # scale folded into W_q
        m_scr[...] = jnp.full(m_scr.shape, -jnp.inf, dtype=jnp.float32)
        l_scr[...] = jnp.zeros(l_scr.shape, dtype=jnp.float32)
        acc_scr[...] = jnp.zeros(acc_scr.shape, dtype=jnp.float32)

    # ---- fused K/V projection for this kv tile (cast to model dtype early) ---
    tkv = hkv_ref.shape[1]
    hk2 = hkv_ref[...].reshape(tb * tkv, f_pad)
    kvp = jnp.dot(hk2, wkv_ref[...],
                  preferred_element_type=jnp.float32).astype(in_dtype)
    k = kvp[:, :f_pad].reshape(tb, tkv, f_pad)           # 128-lane aligned slices
    v = kvp[:, f_pad:].reshape(tb, tkv, f_pad)

    # ---- scores for this kv tile (contract last dims, no explicit transpose) -
    s = jnp.einsum("bqf,bkf->bqk", q_scr[...], k,
                   preferred_element_type=jnp.float32)
    if mask_kv:  # only emitted when the sequence dim was padded
        kv_pos = kv_step * tk + jax.lax.broadcasted_iota(jnp.int32, s.shape, 2)
        s = jnp.where(kv_pos < n_real, s, -jnp.inf)

    # ---- online softmax update (running stats stay f32: v5e-safe) ------------
    m_prev = m_scr[...]
    m_new = jnp.maximum(m_prev, jnp.max(s, axis=-1, keepdims=True))
    alpha = jnp.exp(m_prev - m_new)
    p = jnp.exp(s - m_new)
    l_scr[...] = alpha * l_scr[...] + jnp.sum(p, axis=-1, keepdims=True)
    acc_scr[...] = alpha * acc_scr[...] + jnp.einsum(
        "bqk,bkf->bqf", p.astype(in_dtype), v,
        preferred_element_type=jnp.float32)
    m_scr[...] = m_new

    # ---- finalize on the last kv tile -----------------------------------------
    @pl.when(kv_step == pl.num_programs(2) - 1)
    def _finalize():
        inv_l = pl.reciprocal(l_scr[...], approx=True)   # EUP rcp (~1e-3 rel err)
        o_ref[...] = (acc_scr[...] * inv_l).astype(o_ref.dtype)


def prepare_weights(w_q, w_k, w_v, f_pad, scale):
    """Pad + fuse projection weights; fold the softmax scale into W_q.
    In real use call this once per model (weights are static), not per step."""
    F = w_q.shape[0]

    def pad(w):
        return jnp.pad(w, ((0, f_pad - F), (0, f_pad - F))) if f_pad != F else w

    w_q_p = pad(w_q * scale)                              # 1/sqrt(F) folded in
    w_kv_p = jnp.concatenate([pad(w_k), pad(w_v)], axis=1)  # (F_pad, 2*F_pad)
    return w_q_p, w_kv_p


def _pick_batch_tile(B, tq, target_rows=512):
    """Largest divisor of B with TB*tq <= target_rows, capped at B//2 so the
    parallel batch axis keeps >= 2 grid steps (both v7x TensorCores busy)."""
    cap = max(1, B // 2)
    tb = 1
    for cand in range(1, cap + 1):
        if B % cand == 0 and cand * tq <= max(target_rows, tq):
            tb = cand
    return tb


def _vmem_limit_bytes(tb, tq, tk, f_pad, itemsize):
    """Rough per-step VMEM budget (x2 slack), clamped to safe generation limits."""
    w = 3 * f_pad * f_pad * itemsize                    # resident (single-copy) weights
    hq = 2 * tb * tq * f_pad * itemsize                 # double-buffered query tile
    hkv = 2 * tb * tk * f_pad * itemsize                # double-buffered kv tile
    out = 2 * tb * tq * f_pad * itemsize                # double-buffered output tile
    scr = tb * tq * f_pad * (itemsize + 4) + 2 * tb * tq * 4
    live = tb * (3 * tq * tk * 4 + 2 * tk * f_pad * 4 + tq * f_pad * 4)
    est = w + hq + hkv + out + scr + live
    return int(min(max(2 * est, 32 << 20), 100 << 20))


def self_attention(h, w_q, w_k, w_v, *, batch_tile=None, seq_tile=None):
    B, N, F = h.shape
    assert w_q.shape == (F, F) and w_k.shape == (F, F) and w_v.shape == (F, F)

    # Lane-aligned feature dim; sublane-aligned sequence tiles.  Zero padding is
    # exact: padded weight rows/cols are zero and padded key positions are masked.
    f_pad = _round_up(max(F, LANE), LANE)
    t = seq_tile or min(_round_up(N, SUBLANE), 256)
    tq = tk = t
    n_pad = _round_up(N, t)

    tb = batch_tile or _pick_batch_tile(B, tq)
    assert B % tb == 0

    scale = 1.0 / math.sqrt(F)  # original feature dim, NOT the padded one
    w_q_p, w_kv_p = prepare_weights(w_q, w_k, w_v, f_pad, scale)

    h_p = h
    if (n_pad, f_pad) != (N, F):
        h_p = jnp.pad(h, ((0, 0), (0, n_pad - N), (0, f_pad - F)))

    kernel = functools.partial(flash_self_attention_kernel,
                               n_real=N, tk=tk, mask_kv=(n_pad != N))

    out_p = pl.pallas_call(
        kernel,
        out_shape=jax.ShapeDtypeStruct((B, n_pad, f_pad), h.dtype),
        grid_spec=pltpu.PrefetchScalarGridSpec(
            num_scalar_prefetch=0,
            grid=(B // tb, n_pad // tq, n_pad // tk),
            in_specs=[
                # query-side h tile
                pl.BlockSpec((tb, tq, f_pad), lambda b, qi, ki: (b, qi, 0)),
                # key/value-side h tile
                pl.BlockSpec((tb, tk, f_pad), lambda b, qi, ki: (b, ki, 0)),
                # weights: whole-array resident in VMEM, single copy (no 2x buffering)
                pl.BlockSpec(memory_space=pltpu.MemorySpace.VMEM),   # W_q (pre-scaled)
                pl.BlockSpec(memory_space=pltpu.MemorySpace.VMEM),   # fused [W_k | W_v]
            ],
            out_specs=pl.BlockSpec((tb, tq, f_pad), lambda b, qi, ki: (b, qi, 0)),
            scratch_shapes=[
                pltpu.VMEM((tb, tq, f_pad), h.dtype),      # cached Q tile
                pltpu.VMEM((tb, tq, 1), jnp.float32),      # running max
                pltpu.VMEM((tb, tq, 1), jnp.float32),      # running denominator
                pltpu.VMEM((tb, tq, f_pad), jnp.float32),  # output accumulator
            ],
        ),
        compiler_params=pltpu.CompilerParams(
            dimension_semantics=("parallel", "parallel", "arbitrary"),
            vmem_limit_bytes=_vmem_limit_bytes(tb, tq, tk, f_pad, h.dtype.itemsize),
        ),
    )(h_p, h_p, w_q_p, w_kv_p)

    return out_p[:, :N, :F]


def reference(h, w_q, w_k, w_v):
    q = jnp.einsum("bnf,fg->bng", h, w_q)
    k = jnp.einsum("bnf,fg->bng", h, w_k)
    v = jnp.einsum("bnf,fg->bng", h, w_v)
    s = jnp.einsum("bnf,bmf->bnm", q, k) / math.sqrt(k.shape[-1])
    a = jax.nn.softmax(s, axis=-1)
    return jnp.einsum("bnm,bmf->bnf", a, v)


if __name__ == "__main__":
    B, N, F = 2, 8, 32  # batch, sequence length, feature dim (in == out features)
    key = jax.random.PRNGKey(0)
    k_h, k_q, k_k, k_v = jax.random.split(key, 4)

    h = jax.random.normal(k_h, (B, N, F), dtype=jnp.float32)

    # Parameter init matching reset_parameters: U(-stdv, stdv), stdv = 1/sqrt(out_features)
    stdv = 1.0 / math.sqrt(F)
    w_q = jax.random.uniform(k_q, (F, F), minval=-stdv, maxval=stdv, dtype=jnp.float32)
    w_k = jax.random.uniform(k_k, (F, F), minval=-stdv, maxval=stdv, dtype=jnp.float32)
    w_v = jax.random.uniform(k_v, (F, F), minval=-stdv, maxval=stdv, dtype=jnp.float32)

    out = self_attention(h, w_q, w_k, w_v)
    out = jax.block_until_ready(out)

    ref = reference(h, w_q, w_k, w_v)
    assert out.shape == (B, N, F)
    # Tolerance covers the EUP approximate-reciprocal softmax normalization.
    assert jnp.allclose(out, ref, atol=2e-3, rtol=2e-3), "mismatch vs reference"

    print("KERNEL_OK")
</pallas_src>

<mosaic_0001>
module attributes {stable_mosaic.version = 11 : i64} {
  func.func @flash_self_attention_kernel(%arg0: i32, %arg1: i32, %arg2: i32, %arg3: memref<1x8x128xf32, #tpu.memory_space<vmem>>, %arg4: memref<1x8x128xf32, #tpu.memory_space<vmem>>, %arg5: memref<128x128xf32, #tpu.memory_space<vmem>>, %arg6: memref<128x256xf32, #tpu.memory_space<vmem>>, %arg7: memref<1x8x128xf32, #tpu.memory_space<vmem>>, %arg8: memref<1x8x128xf32, #tpu.memory_space<vmem>>, %arg9: memref<1x8x1xf32, #tpu.memory_space<vmem>>, %arg10: memref<1x8x1xf32, #tpu.memory_space<vmem>>, %arg11: memref<1x8x128xf32, #tpu.memory_space<vmem>>) attributes {dimension_semantics = [#tpu.dimension_semantics<parallel>, #tpu.dimension_semantics<parallel>, #tpu.dimension_semantics<arbitrary>], iteration_bounds = array<i64: 2, 1, 1>, scalar_prefetch = 0 : i64, scratch_operands = 4 : i64, tpu.core_type = #tpu.core_type<tc>, window_params = [{transform_indices = @transform_0, window_bounds = array<i64: 1, 8, 128>}, {transform_indices = @transform_1, window_bounds = array<i64: 1, 8, 128>}, {pipeline_mode = #tpu.pipeline_mode<synchronous>, transform_indices = @transform_2, window_bounds = array<i64: 128, 128>}, {pipeline_mode = #tpu.pipeline_mode<synchronous>, transform_indices = @transform_3, window_bounds = array<i64: 128, 256>}, {transform_indices = @transform_4, window_bounds = array<i64: 1, 8, 128>}]} {
    %c0_i32 = arith.constant 0 : i32
    %0 = arith.cmpi eq, %arg2, %c0_i32 : i32
    %1 = arith.extui %0 : i1 to i32
    %c0_i32_0 = arith.constant 0 : i32
    %2 = arith.cmpi ne, %1, %c0_i32_0 : i32
    scf.if %2 {
      %c0_32 = arith.constant 0 : index
      %c0_33 = arith.constant 0 : index
      %c0_34 = arith.constant 0 : index
      %38 = vector.load %arg3[%c0_32, %c0_33, %c0_34] : memref<1x8x128xf32, #tpu.memory_space<vmem>>, vector<1x8x128xf32>
      %39 = vector.shape_cast %38 : vector<1x8x128xf32> to vector<8x128xf32>
      %c0_35 = arith.constant 0 : index
      %c0_36 = arith.constant 0 : index
      %40 = vector.load %arg5[%c0_35, %c0_36] : memref<128x128xf32, #tpu.memory_space<vmem>>, vector<128x128xf32>
      %cst_37 = arith.constant dense<0.000000e+00> : vector<8x128xf32>
      %41 = tpu.matmul %39, %40, %cst_37 {dimension_numbers = #tpu.dot_dimension_numbers<[1], [0], [0], [1], [0, 0, 1, 1], [], []>} : vector<8x128xf32>, vector<128x128xf32>, vector<8x128xf32> -> vector<8x128xf32>
      %42 = vector.shape_cast %41 : vector<8x128xf32> to vector<1x8x128xf32>
      %c0_38 = arith.constant 0 : index
      %c0_39 = arith.constant 0 : index
      %c0_40 = arith.constant 0 : index
      %43 = vector.load %arg8[%c0_38, %c0_39, %c0_40] : memref<1x8x128xf32, #tpu.memory_space<vmem>>, vector<1x8x128xf32>
      tpu.vector_store %arg8[%c0_38, %c0_39, %c0_40], %42 {strides = array<i32>} : memref<1x8x128xf32, #tpu.memory_space<vmem>>, vector<1x8x128xf32>,
      %cst_41 = arith.constant 0xFF800000 : f32
      %44 = vector.broadcast %cst_41 : f32 to vector<1x8x1xf32>
      %c0_42 = arith.constant 0 : index
      %c0_43 = arith.constant 0 : index
      %c0_44 = arith.constant 0 : index
      %45 = vector.load %arg9[%c0_42, %c0_43, %c0_44] : memref<1x8x1xf32, #tpu.memory_space<vmem>>, vector<1x8x1xf32>
      tpu.vector_store %arg9[%c0_42, %c0_43, %c0_44], %44 {strides = array<i32>} : memref<1x8x1xf32, #tpu.memory_space<vmem>>, vector<1x8x1xf32>,
      %cst_45 = arith.constant 0.000000e+00 : f32
      %46 = vector.broadcast %cst_45 : f32 to vector<1x8x1xf32>
      %c0_46 = arith.constant 0 : index
      %c0_47 = arith.constant 0 : index
      %c0_48 = arith.constant 0 : index
      %47 = vector.load %arg10[%c0_46, %c0_47, %c0_48] : memref<1x8x1xf32, #tpu.memory_space<vmem>>, vector<1x8x1xf32>
      tpu.vector_store %arg10[%c0_46, %c0_47, %c0_48], %46 {strides = array<i32>} : memref<1x8x1xf32, #tpu.memory_space<vmem>>, vector<1x8x1xf32>,
      %cst_49 = arith.constant 0.000000e+00 : f32
      %48 = vector.broadcast %cst_49 : f32 to vector<1x8x128xf32>
      %c0_50 = arith.constant 0 : index
      %c0_51 = arith.constant 0 : index
      %c0_52 = arith.constant 0 : index
      %49 = vector.load %arg11[%c0_50, %c0_51, %c0_52] : memref<1x8x128xf32, #tpu.memory_space<vmem>>, vector<1x8x128xf32>
      tpu.vector_store %arg11[%c0_50, %c0_51, %c0_52], %48 {strides = array<i32>} : memref<1x8x128xf32, #tpu.memory_space<vmem>>, vector<1x8x128xf32>,
    } else {
    }
    %c0 = arith.constant 0 : index
    %c0_1 = arith.constant 0 : index
    %c0_2 = arith.constant 0 : index
    %3 = vector.load %arg4[%c0, %c0_1, %c0_2] : memref<1x8x128xf32, #tpu.memory_space<vmem>>, vector<1x8x128xf32>
    %4 = vector.shape_cast %3 : vector<1x8x128xf32> to vector<8x128xf32>
    %c0_3 = arith.constant 0 : index
    %c0_4 = arith.constant 0 : index
    %5 = vector.load %arg6[%c0_3, %c0_4] : memref<128x256xf32, #tpu.memory_space<vmem>>, vector<128x256xf32>
    %cst = arith.constant dense<0.000000e+00> : vector<8x256xf32>
    %6 = tpu.matmul %4, %5, %cst {dimension_numbers = #tpu.dot_dimension_numbers<[1], [0], [0], [1], [0, 0, 1, 1], [], []>} : vector<8x128xf32>, vector<128x256xf32>, vector<8x256xf32> -> vector<8x256xf32>
    %7 = vector.extract_strided_slice %6 {offsets = [0, 0], sizes = [8, 128], strides = [1, 1]} : vector<8x256xf32> to vector<8x128xf32>
    %8 = vector.shape_cast %7 : vector<8x128xf32> to vector<1x8x128xf32>
    %9 = vector.extract_strided_slice %6 {offsets = [0, 128], sizes = [8, 128], strides = [1, 1]} : vector<8x256xf32> to vector<8x128xf32>
    %10 = vector.shape_cast %9 : vector<8x128xf32> to vector<1x8x128xf32>
    %c0_5 = arith.constant 0 : index
    %c0_6 = arith.constant 0 : index
    %c0_7 = arith.constant 0 : index
    %11 = vector.load %arg8[%c0_5, %c0_6, %c0_7] : memref<1x8x128xf32, #tpu.memory_space<vmem>>, vector<1x8x128xf32>
    "tpu.trace_start"() <{level = 10 : i32, message = "bqf,bkf->bqk"}> : () -> ()
    %cst_8 = arith.constant dense<0.000000e+00> : vector<1x8x8xf32>
    %12 = tpu.matmul %11, %8, %cst_8 {dimension_numbers = #tpu.dot_dimension_numbers<[2], [2], [1], [1], [0, 0, 0, 1, 1, 1], [0], [0]>} : vector<1x8x128xf32>, vector<1x8x128xf32>, vector<1x8x8xf32> -> vector<1x8x8xf32>
    "tpu.trace_stop"() : () -> ()
    %c0_9 = arith.constant 0 : index
    %c0_10 = arith.constant 0 : index
    %c0_11 = arith.constant 0 : index
    %13 = vector.load %arg9[%c0_9, %c0_10, %c0_11] : memref<1x8x1xf32, #tpu.memory_space<vmem>>, vector<1x8x1xf32>
    %cst_12 = arith.constant dense<0xFF800000> : vector<1x8xf32>
    %14 = vector.multi_reduction <maximumf>, %12, %cst_12 [2] : vector<1x8x8xf32> to vector<1x8xf32>
    %15 = vector.shape_cast %14 : vector<1x8xf32> to vector<1x8x1xf32>
    %16 = arith.maximumf %13, %15 : vector<1x8x1xf32>
    %17 = arith.subf %13, %16 : vector<1x8x1xf32>
    %18 = math.exp %17 : vector<1x8x1xf32>
    %19 = vector.broadcast %16 : vector<1x8x1xf32> to vector<1x8x8xf32>
    %20 = arith.subf %12, %19 : vector<1x8x8xf32>
    %21 = math.exp %20 : vector<1x8x8xf32>
    %c0_13 = arith.constant 0 : index
    %c0_14 = arith.constant 0 : index
    %c0_15 = arith.constant 0 : index
    %22 = vector.load %arg10[%c0_13, %c0_14, %c0_15] : memref<1x8x1xf32, #tpu.memory_space<vmem>>, vector<1x8x1xf32>
    %23 = arith.mulf %18, %22 : vector<1x8x1xf32>
    %cst_16 = arith.constant dense<0.000000e+00> : vector<1x8xf32>
    %24 = vector.multi_reduction <add>, %21, %cst_16 [2] : vector<1x8x8xf32> to vector<1x8xf32>
    %25 = vector.shape_cast %24 : vector<1x8xf32> to vector<1x8x1xf32>
    %26 = arith.addf %23, %25 : vector<1x8x1xf32>
    %c0_17 = arith.constant 0 : index
    %c0_18 = arith.constant 0 : index
    %c0_19 = arith.constant 0 : index
    %27 = vector.load %arg10[%c0_17, %c0_18, %c0_19] : memref<1x8x1xf32, #tpu.memory_space<vmem>>, vector<1x8x1xf32>
    tpu.vector_store %arg10[%c0_17, %c0_18, %c0_19], %26 {strides = array<i32>} : memref<1x8x1xf32, #tpu.memory_space<vmem>>, vector<1x8x1xf32>,
    %c0_20 = arith.constant 0 : index
    %c0_21 = arith.constant 0 : index
    %c0_22 = arith.constant 0 : index
    %28 = vector.load %arg11[%c0_20, %c0_21, %c0_22] : memref<1x8x128xf32, #tpu.memory_space<vmem>>, vector<1x8x128xf32>
    %29 = vector.broadcast %18 : vector<1x8x1xf32> to vector<1x8x128xf32>
    %30 = arith.mulf %29, %28 : vector<1x8x128xf32>
    "tpu.trace_start"() <{level = 10 : i32, message = "bqk,bkf->bqf"}> : () -> ()
    %cst_23 = arith.constant dense<0.000000e+00> : vector<1x8x128xf32>
    %31 = tpu.matmul %21, %10, %cst_23 {dimension_numbers = #tpu.dot_dimension_numbers<[2], [1], [1], [2], [0, 0, 0, 1, 1, 2], [0], [0]>} : vector<1x8x8xf32>, vector<1x8x128xf32>, vector<1x8x128xf32> -> vector<1x8x128xf32>
    "tpu.trace_stop"() : () -> ()
    %32 = arith.addf %30, %31 : vector<1x8x128xf32>
    %c0_24 = arith.constant 0 : index
    %c0_25 = arith.constant 0 : index
    %c0_26 = arith.constant 0 : index
    %33 = vector.load %arg11[%c0_24, %c0_25, %c0_26] : memref<1x8x128xf32, #tpu.memory_space<vmem>>, vector<1x8x128xf32>
    tpu.vector_store %arg11[%c0_24, %c0_25, %c0_26], %32 {strides = array<i32>} : memref<1x8x128xf32, #tpu.memory_space<vmem>>, vector<1x8x128xf32>,
    %c0_27 = arith.constant 0 : index
    %c0_28 = arith.constant 0 : index
    %c0_29 = arith.constant 0 : index
    %34 = vector.load %arg9[%c0_27, %c0_28, %c0_29] : memref<1x8x1xf32, #tpu.memory_space<vmem>>, vector<1x8x1xf32>
    tpu.vector_store %arg9[%c0_27, %c0_28, %c0_29], %16 {strides = array<i32>} : memref<1x8x1xf32, #tpu.memory_space<vmem>>, vector<1x8x1xf32>,
    %c0_i32_30 = arith.constant 0 : i32
    %35 = arith.cmpi eq, %arg2, %c0_i32_30 : i32
    %36 = arith.extui %35 : i1 to i32
    %c0_i32_31 = arith.constant 0 : i32
    %37 = arith.cmpi ne, %36, %c0_i32_31 : i32
    scf.if %37 {
      %c0_32 = arith.constant 0 : index
      %c0_33 = arith.constant 0 : index
      %c0_34 = arith.constant 0 : index
      %38 = vector.load %arg10[%c0_32, %c0_33, %c0_34] : memref<1x8x1xf32, #tpu.memory_space<vmem>>, vector<1x8x1xf32>
      %39 = tpu.reciprocal %38 {approx = true} : vector<1x8x1xf32> -> vector<1x8x1xf32>
      %c0_35 = arith.constant 0 : index
      %c0_36 = arith.constant 0 : index
      %c0_37 = arith.constant 0 : index
      %40 = vector.load %arg11[%c0_35, %c0_36, %c0_37] : memref<1x8x128xf32, #tpu.memory_space<vmem>>, vector<1x8x128xf32>
      %41 = vector.broadcast %39 : vector<1x8x1xf32> to vector<1x8x128xf32>
      %42 = arith.mulf %40, %41 : vector<1x8x128xf32>
      %c0_38 = arith.constant 0 : index
      %c0_39 = arith.constant 0 : index
      %c0_40 = arith.constant 0 : index
      %43 = vector.load %arg7[%c0_38, %c0_39, %c0_40] : memref<1x8x128xf32, #tpu.memory_space<vmem>>, vector<1x8x128xf32>
      tpu.vector_store %arg7[%c0_38, %c0_39, %c0_40], %42 {strides = array<i32>} : memref<1x8x128xf32, #tpu.memory_space<vmem>>, vector<1x8x128xf32>,
    } else {
    }
    return
  }
  func.func @transform_0(%arg0: i32, %arg1: i32, %arg2: i32) -> (i32, i32, i32) {
    %c0_i32 = arith.constant 0 : i32
    %c0_i32_0 = arith.constant 0 : i32
    return %arg0, %arg1, %c0_i32 : i32, i32, i32
  }
  func.func @transform_1(%arg0: i32, %arg1: i32, %arg2: i32) -> (i32, i32, i32) {
    %c0_i32 = arith.constant 0 : i32
    %c0_i32_0 = arith.constant 0 : i32
    return %arg0, %arg2, %c0_i32 : i32, i32, i32
  }
  func.func @transform_2(%arg0: i32, %arg1: i32, %arg2: i32) -> (i32, i32) {
    %c0_i32 = arith.constant 0 : i32
    %c0_i32_0 = arith.constant 0 : i32
    %c0_i32_1 = arith.constant 0 : i32
    return %c0_i32, %c0_i32_0 : i32, i32
  }
  func.func @transform_3(%arg0: i32, %arg1: i32, %arg2: i32) -> (i32, i32) {
    %c0_i32 = arith.constant 0 : i32
    %c0_i32_0 = arith.constant 0 : i32
    %c0_i32_1 = arith.constant 0 : i32
    return %c0_i32, %c0_i32_0 : i32, i32
  }
  func.func @transform_4(%arg0: i32, %arg1: i32, %arg2: i32) -> (i32, i32, i32) {
    %c0_i32 = arith.constant 0 : i32
    %c0_i32_0 = arith.constant 0 : i32
    return %arg0, %arg1, %c0_i32 : i32, i32, i32
  }
}

</mosaic_0001>

<bundles_post_ra>
// kernel: tpu_custom_call.1
= control target key start
LH: loop header
LB: loop body
LE: loop exit
PB: predicated region body
PF: predicated region fallthrough
CT: control target
= control target key end

     0   :  { %s1656_s0 = inlined_call_operand.hbm [shape: f32[2,8,128], index: 0, kind: input, shape index: {}]   ;;  %s1657_s1 = inlined_call_operand.hbm [shape: f32[2,8,128], index: 1, kind: input, shape index: {}]   ;;  %s1658_s2 = inlined_call_operand.hbm [shape: f32[128,128], index: 2, kind: input, shape index: {}]   ;;  %s1659_s3 = inlined_call_operand.hbm [shape: f32[128,256], index: 3, kind: input, shape index: {}]   ;;  %s1660_s4 = inlined_call_operand.hbm [shape: f32[2,8,128], index: 4, kind: output, shape index: {}]  }
   0x1   :  { %1666 = sst [smem:[#allocation21_spill]] %s1658_s2 }
   0x2   :  { %1667 = sst [smem:[#allocation22_spill]] %s1659_s3 }
   0x3   :  { %9 = vsyncpa [#allocation7], 0 }
   0x4   :  { %11 = vsyncpa [#allocation7 + $0x1], 0 }
   0x5   :  { %12 = vsyncpa [#allocation10], 0 }
   0x6   :  { %14 = vsyncpa [#allocation10 + $0x1], 0 }
   0x7   :  { %15 = vsyncpa [#allocation13], 0 }
   0x8   :  { %16 = vsyncpa [#allocation8], 0 }
   0x9   :  { %18 = vsyncpa [#allocation8 + $0x1], 0  ;;  %s1338_s15 = smov 0   ;;  %s1340_s16 = smov 0  }
   0xa   :  { %s1342_s17 = smov 0   ;;  %s1344_s18 = smov 0  }
   0xb   :  { %s1346_s19 = smov 0   ;;  %s1348_s20 = smov 0  }
   0xc LB: > { %s1369_s21 = sadd.s32 4294967295, %s1297_s20   ;;  %s840_s22 = sadd.s32 4294967294, %s1297_s20   ;;  %s1297_s20 = sphi %s1348_s20, %s24_s20   ;;  %s1293_s19 = sphi %s1346_s19, %s1692_s19   ;;  %s1289_s18 = sphi %s1344_s18, %s1691_s18   ;;  %s1285_s17 = sphi %s1342_s17, %s1690_s17   ;;  %s1281_s16 = sphi %s1340_s16, %s1689_s16   ;;  %s1277_s15 = sphi %s1338_s15, %s1688_s15  }
   0xd   : > { %p65_p0 = scmp.ne.s32.totalorder %s1281_s16, %s1277_s15  ;;  %p1661_p1 = scmp.eq.s32.totalorder %s1369_s21, 0 }
   0xe   : > { %p167_p3 = scmp.eq.s32.totalorder %s840_s22, 1  ;;  %p841_p5 = scmp.ge.s32.totalorder %s1297_s20, 1 }
   0xf   : > { %p1378_p4 = por %p1661_p1, %p65_p0  ;;  %p174_p7 = scmp.lt.s32.totalorder %s1297_s20, 3 }
  0x10   : > { %p1383_p6 = por %p167_p3, %p65_p0  ;;  %s1299_s26 = smov [#allocation11]  }
  0x11   : > { %s1668_s23 = scalar_select %p1378_p4, 1, 0 }
  0x12   : > { %s1669_s24 = scalar_select %p1383_p6, 1, 0 }
  0x13   : > { %p1388_p8 = pnand %p841_p5, %p174_p7  ;;  %s186_s27 = sshll.u32 %s1299_s26, 4  ;;  %s1392_s27 = int_to_ptr.vmem [resolvable:$true] %s186_s27 }
  0x14   : > { %s1300_s29 = smov [#allocation12]   ;;  %s1672_s2 = sld [smem:[#allocation21_spill]] }
  0x15   : > { %s1670_s25 = scalar_select %p1388_p8, 1, 0 }
  0x16   : > { %p996_p9 = pneg %p1388_p8  ;;  %s199_s30 = sshll.u32 %s1300_s29, 4  ;;  %s1403_s30 = int_to_ptr.vmem [resolvable:$true] %s199_s30 }
  0x18   : > { %p1399_p11 = pnand %p996_p9, %p1661_p1 }
  0x1a   : > { %s1087_s7 = scalar_lea.hbm %s1672_s2, 2048  ;;  %p1089_p13 = pneg %p1399_p11 }
  0x1b   : > { %p1088_p12 = scmp.ne.s32.totalorder %s1672_s2, %s1087_s7  ;;  %p1094_p5 = scmp.lt.u32.totalorder %s1087_s7, %s1672_s2 }
  0x1d   : > { %p1090_p0 = pnand %p1089_p13, %p1088_p12 }
  0x1f   : > { %p1091_p3 = pneg %p1090_p0 }
  0x21   : > { %p1096_p7 = pnand %p1094_p5, %p1091_p3 }
  0x23   : > { %1099 = shalt.err (!%p1096_p7)
}
  0x24   : > { %s1100_s12 = scalar_lea.vmem %s1392_s27, 2048  ;;  %p1108_p2 = scmp.lt.s32.totalorder %s1392_s27, %s1392_s27 }
  0x25   : > { %p1101_p9 = scmp.ne.s32.totalorder %s1392_s27, %s1100_s12  ;;  %p1109_p12 = scmp.lt.s32.totalorder %s1100_s12, %s1100_s12 }
  0x27   : > { %p1103_p10 = pnand %p1101_p9, %p1089_p13  ;;  %p1110_p0 = por %p1109_p12, %p1108_p2 }
  0x29   : > { %p1104_p1 = pneg %p1103_p10 }
  0x2b   : > { %p1111_p6 = pnand %p1110_p0, %p1104_p1 }
  0x2d   : > { %1114 = shalt.err (!%p1111_p6)
}
  0x2e   : > { %s1301_s13 = smov 128   ;;  %s1302_s14 = smov 8  }
  0x2f   : > { %999 = dma.hbm_to_vmem [thread:$0]  (!%p1399_p11), %s1672_s2, 2048, %s1392_s27, [#allocation10], %s1301_s13, %s1301_s13, %s1302_s14  }
  0x30   : > { %s1673_s3 = sld [smem:[#allocation22_spill]] }
  0x36   : > { %s1115_s6 = scalar_lea.hbm %s1673_s3, 4096 }
  0x37   : > { %p1116_p2 = scmp.ne.s32.totalorder %s1673_s3, %s1115_s6  ;;  %p1122_p10 = scmp.lt.u32.totalorder %s1115_s6, %s1673_s3 }
  0x39   : > { %p1118_p1 = pnand %p1116_p2, %p1089_p13 }
  0x3b   : > { %p1119_p6 = pneg %p1118_p1 }
  0x3d   : > { %p1124_p3 = pnand %p1122_p10, %p1119_p6 }
  0x3f   : > { %1127 = shalt.err (!%p1124_p3)
}
  0x40   : > { %s1128_s27 = scalar_lea.vmem %s1403_s30, 4096  ;;  %p1136_p12 = scmp.lt.s32.totalorder %s1403_s30, %s1403_s30 }
  0x41   : > { %p1129_p5 = scmp.ne.s32.totalorder %s1403_s30, %s1128_s27  ;;  %p1137_p0 = scmp.lt.s32.totalorder %s1128_s27, %s1128_s27 }
  0x43   : > { %p1131_p7 = pnand %p1129_p5, %p1089_p13  ;;  %p1138_p2 = por %p1137_p0, %p1136_p12 }
  0x45   : > { %p1132_p9 = pneg %p1131_p7 }
  0x47   : > { %p1139_p1 = pnand %p1138_p2, %p1132_p9 }
  0x49   : > { %1142 = shalt.err (!%p1139_p1)
}
  0x4a   : > { %s1303_s11 = smov 256   ;;  %s1304_s12 = smov 16  }
  0x4b   : > { %1002 = dma.hbm_to_vmem [thread:$0]  (!%p1399_p11), %s1673_s3, 4096, %s1403_s30, [#allocation13], %s1303_s11, %s1303_s11, %s1304_s12  }
  0x4c   : > { %s43_s22 = sadd.s32 1, %s1293_s19  ;;  %s52_s26 = sadd.s32 1, %s1285_s17 }
  0x4d   : > { %p45_p13 = scmp.ge.s32.totalorder %s43_s22, 2  ;;  %p59_p6 = scmp.ne.s32.totalorder %s1285_s17, %s1281_s16 }
  0x4e   : > { %p60_p10 = scmp.eq.s32.totalorder %s1297_s20, 0  ;;  %p1016_p3 = scmp.lt.s32.totalorder %s1297_s20, 2 }
  0x4f   : > { %s1694_s22 = smov (%p45_p13, %s43_s22), 0  ;;  %p1675_p7 = scmp.eq.s32.totalorder %s1369_s21, 1 }
  0x50   : > { %1674 = sst [smem:[#allocation20_spill]] %s1694_s22  ;;  %p61_p5 = por %p60_p10, %p59_p6 }
  0x51   : > { %p1467_p9 = por %p1675_p7, %p59_p6  ;;  %s47_s28 = ssub.s32 %s1293_s19, %s1694_s22 }
  0x52   : > { %s213_s5 = sand.u32 1, %s1285_s17   ;;  %p50_p12 = scmp.eq.s32.totalorder %s47_s28, 0 }
  0x53   : > { %s1676_s29 = scalar_select %p1467_p9, 1, 0 }
  0x54   : > { %s1474_s30 = sshll.u32 %s213_s5, 3  ;;  %s846_s6 = sshll.u32 %s1293_s19, 7 }
  0x55   : > { %s1478_s7 = scalar_select %p50_p12, %s1285_s17, %s52_s26  }
  0x56   : > { %s1483_s10 = scalar_lea.hbm %s1656_s0, %s846_s6  ;;  %s217_s27 = scalar_lea.vmem [#allocation6], %s1474_s30 }
  0x57   : > { %s225_s11 = sshll.u32 %s217_s27, 4  ;;  %p1488_p11 = pnand %p1016_p3, %p61_p5  ;;  %s1492_s11 = int_to_ptr.vmem [resolvable:$true] %s225_s11 }
  0x58   : > { %s1497_s26 = scalar_lea.hbm %s1657_s1, %s846_s6  ;;  %s214_s28 = scalar_lea.sflag [#allocation7], %s213_s5 }
  0x59   : > { %s1143_s8 = scalar_lea.hbm %s1483_s10, 128  ;;  %p1145_p2 = pneg %p1488_p11 }
  0x5a   : > { %p1144_p0 = scmp.ne.s32.totalorder %s1483_s10, %s1143_s8  ;;  %s1148_s2 = scalar_lea.hbm %s1656_s0, 256 }
  0x5b   : > { %p1149_p6 = scmp.lt.u32.totalorder %s1483_s10, %s1656_s0  ;;  %p1150_p10 = scmp.lt.u32.totalorder %s1148_s2, %s1143_s8 }
  0x5c   : > { %p1146_p1 = pnand %p1145_p2, %p1144_p0  ;;  %p1152_p5 = scmp.lt.u32.totalorder %s1143_s8, %s1483_s10 }
  0x5d   : > { %p1151_p3 = por %p1150_p10, %p1149_p6 }
  0x5e   : > { %p1147_p13 = pneg %p1146_p1 }
  0x5f   : > { %p1153_p7 = por %p1152_p5, %p1151_p3 }
  0x61   : > { %p1154_p12 = pnand %p1153_p7, %p1147_p13 }
  0x63   : > { %1157 = shalt.err (!%p1154_p12)
}
  0x64   : > { %s1158_s5 = scalar_lea.vmem %s1492_s11, 128  ;;  %s1305_s6 = smov [#allocation6]  }
  0x65   : > { %p1159_p0 = scmp.ne.s32.totalorder %s1492_s11, %s1158_s5  ;;  %s1163_s13 = sshll.u32 %s1305_s6, 4  ;;  %s1164_s13 = int_to_ptr.vmem [resolvable:$false] %s1163_s13 }
  0x66   : > { %s1165_s3 = scalar_lea.vmem %s1164_s13, 256  ;;  %p1166_p4 = scmp.lt.s32.totalorder %s1492_s11, %s1164_s13 }
  0x67   : > { %p1161_p1 = pnand %p1159_p0, %p1145_p2  ;;  %p1167_p6 = scmp.lt.s32.totalorder %s1165_s3, %s1158_s5 }
  0x69   : > { %p1162_p9 = pneg %p1161_p1  ;;  %p1168_p10 = por %p1167_p6, %p1166_p4 }
  0x6b   : > { %p1169_p3 = pnand %p1168_p10, %p1162_p9 }
  0x6d   : > { %1172 = shalt.err (!%p1169_p3)
}
  0x6e   : > { %1006 = dma.hbm_to_vmem [thread:$0]  (!%p1488_p11), %s1483_s10, 128, %s1492_s11, %s214_s28  }
  0x6f   : > { %s232_s2 = sand.u32 1, %s1297_s20   ;;  %s236_s22 = scalar_lea.vmem [#allocation9], %s1474_s30 }
  0x70   : > { %s244_s14 = sshll.u32 %s236_s22, 4  ;;  %s233_s8 = scalar_lea.sflag [#allocation10], %s232_s2  ;;  %s245_s14 = int_to_ptr.vmem [resolvable:$true] %s244_s14 }
  0x71   : > { %s1173_s9 = scalar_lea.hbm %s1497_s26, 128  ;;  %s1178_s6 = scalar_lea.hbm %s1657_s1, 256 }
  0x72   : > { %p1174_p4 = scmp.ne.s32.totalorder %s1497_s26, %s1173_s9  ;;  %p1179_p5 = scmp.lt.u32.totalorder %s1497_s26, %s1657_s1 }
  0x73   : > { %p1180_p7 = scmp.lt.u32.totalorder %s1178_s6, %s1173_s9  ;;  %p1182_p0 = scmp.lt.u32.totalorder %s1173_s9, %s1497_s26 }
  0x74   : > { %p1176_p9 = pnand %p1174_p4, %p1145_p2 }
  0x75   : > { %p1181_p12 = por %p1180_p7, %p1179_p5 }
  0x76   : > { %p1177_p13 = pneg %p1176_p9 }
  0x77   : > { %p1183_p1 = por %p1182_p0, %p1181_p12 }
  0x79   : > { %p1184_p6 = pnand %p1183_p1, %p1177_p13 }
  0x7b   : > { %1187 = shalt.err (!%p1184_p6)
}
  0x7c   : > { %s1188_s30 = scalar_lea.vmem %s245_s14, 128  ;;  %s1306_s10 = smov [#allocation9]  }
  0x7d   : > { %p1189_p10 = scmp.ne.s32.totalorder %s245_s14, %s1188_s30  ;;  %s1193_s11 = sshll.u32 %s1306_s10, 4  ;;  %s1194_s11 = int_to_ptr.vmem [resolvable:$false] %s1193_s11 }
  0x7e   : > { %s1195_s28 = scalar_lea.vmem %s1194_s11, 256  ;;  %p1196_p9 = scmp.lt.s32.totalorder %s245_s14, %s1194_s11 }
  0x7f   : > { %p1191_p3 = pnand %p1189_p10, %p1145_p2  ;;  %p1197_p8 = scmp.lt.s32.totalorder %s1195_s28, %s1188_s30 }
  0x81   : > { %p1192_p4 = pneg %p1191_p3  ;;  %p1198_p5 = por %p1197_p8, %p1196_p9 }
  0x83   : > { %p1199_p7 = pnand %p1198_p5, %p1192_p4 }
  0x85   : > { %1202 = shalt.err (!%p1199_p7)
}
  0x86   : > { %1009 = dma.hbm_to_vmem [thread:$0]  (!%p1488_p11), %s1497_s26, 128, %s245_s14, %s233_s8  }
  0x87   : > { %p1678_p13 = scmp.ne.s32.totalorder %s1670_s25, 0 }
  0x88   : > { %s1548_s2 = sand.u32 (!%p1678_p13), 1, %s1281_s16   ;;  %p1679_p8 = scmp.ne.s32.totalorder (!%p1678_p13), %s1668_s23, 0 }
  0x89   : > { %253 = sbr.rel (%p1678_p13) target bundleno = 1214 (0x4be), region = 36  ;;  %s1551_s22 = sshll.u32 (!%p1678_p13), %s1548_s2, 3 }
  0x8a   : > { %s256_s9 = scalar_lea.sflag (!%p1678_p13), [#allocation7], %s1548_s2  ;;  %s259_s27 = scalar_lea.vmem (!%p1678_p13), [#allocation6], %s1551_s22 }
  0x90   : > { %1256 = dma.done.wait (%p1679_p8), %s256_s9, 128  }
  0x91   : > { %1258 = vsyncadd (%p1679_p8), %s256_s9, 4294967168  ;;  %s264_s25 = sand.u32 1, %s1369_s21   ;;  %s268_s26 = scalar_lea.vmem [#allocation9], %s1551_s22 }
  0x92   : > { %s265_s12 = scalar_lea.sflag [#allocation10], %s264_s25 }
  0x93   : > { %1260 = dma.done.wait (%p1679_p8), %s265_s12, 128  }
  0x94   : > { %1262 = vsyncadd (%p1679_p8), %s265_s12, 4294967168  ;;  %p1680_p11 = scmp.eq.s32.totalorder %s1369_s21, 0 }
  0x96   : > { %1264 = dma.done.wait (%p1680_p11), [#allocation10], 2048   ;;  %p1681_p2 = pmov %p1680_p11 }
  0x98   : > { %1266 = vsyncadd (%p1681_p2), [#allocation10], 4294965248  ;;  %p1682_p12 = pmov %p1681_p2 }
  0x99   : > { %p1683_p0 = pmov %p1681_p2 }
  0x9a   : > { %1268 = dma.done.wait (%p1682_p12), [#allocation13], 4096  }
  0x9b   : > { %1270 = vsyncadd (%p1683_p0), [#allocation13], 4294963200  ;;  %v1307_v0 = vmov 0.0|0.0   ;;  %v1308_v1 = vmov 0.0   ;;  %vm1309_vm0 = vmmov 0   ;;  %v404_v2 = vld [vmem:[#allocation12 + $0x8] sm:$0xff] }
  0x9c   : > { %926 = vmatprep.subr.bf16.mxu0 %v1307_v0  ;;  %499 = vmatprep.mubr.f32.mxu1 %v1308_v1  ;;  %v406_v3 = vld [vmem:[#allocation12 + $0x18] sm:$0xff]  ;;  %v403_v4 = vld [vmem:[#allocation12] sm:$0xff]  ;;  %v405_v6 = vld [vmem:[#allocation12 + $0x10] sm:$0xff]  ;;  %vm398_vm1 = vcmask 7168   ;;  %vm578_vm2 = vcmask 64512   ;;  %s857_s21 = sshll.u32 %s1289_s18, 7 }
  0x9d   : > { %913 = vmatprep.mubr.msk.f32.mxu0 %vm1309_vm0, %v1308_v1  ;;  %v950_v5 = vpack.c.bf16 %v406_v3, %v404_v2  ;;  %v311_v7 = vld [vmem:[#allocation11] sm:$0xff]  ;;  %v312_v8 = vld [vmem:[#allocation11 + $0x8] sm:$0xff]  ;;  %v952_v9 = vpack.c.bf16 %v405_v6, %v403_v4  ;;  %v410_v12 = vld [vmem:[#allocation12 + $0x38] sm:$0xff]  ;;  %400 = vst.msk [vmem:[#allocation4] sm:$0xff] %vm398_vm1, %v1308_v1  ;;  %s305_s23 = scalar_lea.vmem [#allocation14], %s1551_s22  ;;  %s1607_s6 = scalar_lea.hbm %s1660_s4, %s857_s21 }
  0x9e   : > { %v927_v10 = vpack.c.bf16 %v312_v8, %v311_v7  ;;  %v408_v11 = vld [vmem:[#allocation12 + $0x28] sm:$0xff]  ;;  %v407_v13 = vld [vmem:[#allocation12 + $0x20] sm:$0xff]  ;;  %v409_v15 = vld [vmem:[#allocation12 + $0x30] sm:$0xff]  ;;  %s713_s14 = sshll.u32 %s305_s23, 4  ;;  %s699_s13 = scalar_lea.sflag [#allocation8], %s1548_s2  ;;  %s1609_s14 = int_to_ptr.vmem [resolvable:$true] %s713_s14 }
  0x9f   : > { %951 = vmatprep.subr.bf16.mxu1 %v950_v5  ;;  %v954_v14 = vpack.c.bf16 %v410_v12, %v408_v11  ;;  %v313_v16 = vld [vmem:[#allocation11 + $0x10] sm:$0xff]  ;;  %v314_v17 = vld [vmem:[#allocation11 + $0x18] sm:$0xff]  ;;  %v956_v18 = vpack.c.bf16 %v409_v15, %v407_v13  ;;  %v412_v20 = vld [vmem:[#allocation12 + $0x48] sm:$0xff]  ;;  %s1203_s3 = scalar_lea.vmem %s1609_s14, 128  ;;  %p1684_p6 = scmp.ne.s32.totalorder %s1676_s29, 0 }
  0xa0   : > { %953 = vmatpush1.bf16.msra.mxu1 %v952_v9  ;;  %928 = vmatpush3.bf16.msra.mxu0 %v927_v10  ;;  %v930_v19 = vpack.c.bf16 %v314_v17, %v313_v16  ;;  %v414_v21 = vld [vmem:[#allocation12 + $0x58] sm:$0xff]  ;;  %v411_v22 = vld [vmem:[#allocation12 + $0x40] sm:$0xff]  ;;  %v413_v24 = vld [vmem:[#allocation12 + $0x50] sm:$0xff]  ;;  %v1310_v17 = vmov -inf   ;;  %p1204_p1 = scmp.ne.s32.totalorder %s1609_s14, %s1203_s3  ;;  %s1312_s18 = smov [#allocation14]  }
  0xa1   : > { %955 = vmatprep.subr.bf16.mxu1 %v954_v14  ;;  %929 = vmatprep.subr.bf16.mxu0 %v1307_v0  ;;  %v958_v23 = vpack.c.bf16 %v414_v21, %v412_v20  ;;  %v315_v25 = vld [vmem:[#allocation11 + $0x20] sm:$0xff]  ;;  %v316_v26 = vld [vmem:[#allocation11 + $0x28] sm:$0xff]  ;;  %v418_v28 = vld [vmem:[#allocation12 + $0x78] sm:$0xff]  ;;  %v960_v29 = vpack.c.bf16 %v413_v24, %v411_v22  ;;  %399 = vst.msk [vmem:[#allocation3] sm:$0xff] %vm398_vm1, %v1310_v17  ;;  %v1311_v21 = vmov 0   ;;  %s1207_s30 = sshll.u32 %s1312_s18, 4  ;;  %s1208_s30 = int_to_ptr.vmem [resolvable:$false] %s1207_s30 }
  0xa2   : > { %v416_v27 = vld [vmem:[#allocation12 + $0x68] sm:$0xff]  ;;  %v933_v30 = vpack.c.bf16 %v316_v26, %v315_v25  ;;  %v415_v31 = vld [vmem:[#allocation12 + $0x60] sm:$0xff]  ;;  %v417_v33 = vld [vmem:[#allocation12 + $0x70] sm:$0xff]  ;;  %1079 = vset.pattern.permute.xlu0 %v1311_v21  ;;  %1080 = vset.pattern.permute.xlu1 %v1311_v21  ;;  %p1205_p10 = pnand %p1204_p1, %p1684_p6  ;;  %s1209_s10 = scalar_lea.vmem %s1208_s30, 256 }
  0xa3   : > { %v962_v32 = vpack.c.bf16 %v418_v28, %v416_v27  ;;  %v317_v34 = vld [vmem:[#allocation11 + $0x30] sm:$0xff]  ;;  %v318_v35 = vld [vmem:[#allocation11 + $0x38] sm:$0xff]  ;;  %v420_v36 = vld [vmem:[#allocation12 + $0x88] sm:$0xff]  ;;  %v964_v38 = vpack.c.bf16 %v417_v33, %v415_v31  ;;  %p1210_p4 = scmp.lt.s32.totalorder %s1609_s14, %s1208_s30  ;;  %p1211_p9 = scmp.lt.s32.totalorder %s1209_s10, %s1203_s3 }
  0xa4   : > { %957 = vmatpush1.bf16.msra.mxu1 %v956_v18  ;;  %931 = vmatpush3.bf16.msra.mxu0 %v930_v19  ;;  %v422_v37 = vld [vmem:[#allocation12 + $0x98] sm:$0xff]  ;;  %v936_v39 = vpack.c.bf16 %v318_v35, %v317_v34  ;;  %v419_v40 = vld [vmem:[#allocation12 + $0x80] sm:$0xff]  ;;  %v421_v42 = vld [vmem:[#allocation12 + $0x90] sm:$0xff]  ;;  %p1206_p3 = pneg %p1205_p10 }
  0xa5   : > { %959 = vmatprep.subr.bf16.mxu1 %v958_v23  ;;  %932 = vmatprep.subr.bf16.mxu0 %v1307_v0  ;;  %v966_v41 = vpack.c.bf16 %v422_v37, %v420_v36  ;;  %v319_v43 = vld [vmem:[#allocation11 + $0x40] sm:$0xff]  ;;  %v320_v44 = vld [vmem:[#allocation11 + $0x48] sm:$0xff]  ;;  %v426_v46 = vld [vmem:[#allocation12 + $0xb8] sm:$0xff]  ;;  %v968_v47 = vpack.c.bf16 %v421_v42, %v419_v40  ;;  %p1212_p5 = por %p1211_p9, %p1210_p4 }
  0xa6   : > { %v424_v45 = vld [vmem:[#allocation12 + $0xa8] sm:$0xff]  ;;  %v939_v48 = vpack.c.bf16 %v320_v44, %v319_v43  ;;  %v423_v49 = vld [vmem:[#allocation12 + $0xa0] sm:$0xff]  ;;  %v425_v51 = vld [vmem:[#allocation12 + $0xb0] sm:$0xff] }
  0xa7   : > { %v970_v50 = vpack.c.bf16 %v426_v46, %v424_v45  ;;  %v321_v52 = vld [vmem:[#allocation11 + $0x50] sm:$0xff]  ;;  %v322_v53 = vld [vmem:[#allocation11 + $0x58] sm:$0xff]  ;;  %v428_v54 = vld [vmem:[#allocation12 + $0xc8] sm:$0xff]  ;;  %v972_v56 = vpack.c.bf16 %v425_v51, %v423_v49  ;;  %p1213_p7 = pnand %p1212_p5, %p1206_p3 }
  0xa8   : > { %961 = vmatpush1.bf16.msra.mxu1 %v960_v29  ;;  %934 = vmatpush3.bf16.msra.mxu0 %v933_v30  ;;  %v430_v55 = vld [vmem:[#allocation12 + $0xd8] sm:$0xff]  ;;  %v942_v57 = vpack.c.bf16 %v322_v53, %v321_v52  ;;  %v427_v58 = vld [vmem:[#allocation12 + $0xc0] sm:$0xff]  ;;  %v429_v60 = vld [vmem:[#allocation12 + $0xd0] sm:$0xff] }
  0xa9   : > { %963 = vmatprep.subr.bf16.mxu1 %v962_v32  ;;  %935 = vmatprep.subr.bf16.mxu0 %v1307_v0  ;;  %v974_v59 = vpack.c.bf16 %v430_v55, %v428_v54  ;;  %v323_v61 = vld [vmem:[#allocation11 + $0x60] sm:$0xff]  ;;  %v324_v62 = vld [vmem:[#allocation11 + $0x68] sm:$0xff]  ;;  %v434_v2 = vld [vmem:[#allocation12 + $0xf8] sm:$0xff]  ;;  %v976_v3 = vpack.c.bf16 %v429_v60, %v427_v58 }
  0xaa   : > { %v432_v63 = vld [vmem:[#allocation12 + $0xe8] sm:$0xff]  ;;  %v945_v4 = vpack.c.bf16 %v324_v62, %v323_v61  ;;  %v431_v5 = vld [vmem:[#allocation12 + $0xe0] sm:$0xff]  ;;  %v433_v7 = vld [vmem:[#allocation12 + $0xf0] sm:$0xff] }
  0xab   : > { %v978_v6 = vpack.c.bf16 %v434_v2, %v432_v63  ;;  %v325_v8 = vld [vmem:[#allocation11 + $0x70] sm:$0xff]  ;;  %v326_v9 = vld [vmem:[#allocation11 + $0x78] sm:$0xff]  ;;  %v980_v10 = vpack.c.bf16 %v433_v7, %v431_v5  ;;  %v310_v13 = vld [vmem:[%s259_s27] sm:$0xff] }
  0xac   : > { %965 = vmatpush1.bf16.msra.mxu1 %v964_v38  ;;  %937 = vmatpush3.bf16.msra.mxu0 %v936_v39  ;;  %v948_v11 = vpack.c.bf16 %v326_v9, %v325_v8  ;;  %v402_v12 = vld [vmem:[%s268_s26] sm:$0xff] }
  0xad   : > { %967 = vmatprep.subr.bf16.mxu1 %v966_v41  ;;  %938 = vmatprep.subr.bf16.mxu0 %v1307_v0  ;;  %v577_v22 = vld [vmem:[#allocation3] sm:$0xff]  ;;  %v594_v32 = vld [vmem:[#allocation4] sm:$0xff] }
  0xb0   : > { %969 = vmatpush1.bf16.msra.mxu1 %v968_v47  ;;  %940 = vmatpush3.bf16.msra.mxu0 %v939_v48 }
  0xb1   : > { %971 = vmatprep.subr.bf16.mxu1 %v970_v50  ;;  %941 = vmatprep.subr.bf16.mxu0 %v1307_v0 }
  0xb4   : > { %973 = vmatpush1.bf16.msra.mxu1 %v972_v56  ;;  %943 = vmatpush3.bf16.msra.mxu0 %v942_v57 }
  0xb5   : > { %975 = vmatprep.subr.bf16.mxu1 %v974_v59  ;;  %944 = vmatprep.subr.bf16.mxu0 %v1307_v0 }
  0xb8   : > { %977 = vmatpush1.bf16.msra.mxu1 %v976_v3  ;;  %946 = vmatpush3.bf16.msra.mxu0 %v945_v4 }
  0xb9   : > { %979 = vmatprep.subr.bf16.mxu1 %v978_v6  ;;  %947 = vmatprep.subr.bf16.mxu0 %v1307_v0 }
  0xbc   : > { %981 = vmatpush1.bf16.msra.mxu1 %v980_v10  ;;  %949 = vmatpush3.bf16.msra.mxu0 %v948_v11 }
  0xbd   : > { %916 = vmatprep.subr.mxu0 %v1308_v1  ;;  %921 = vmatprep.subr.mxu1 %v1308_v1 }
  0xbf   : > { %500 = vmatmul.mubr.f32.vlgmr.msra.gmra.mrb[0].mxu1 %v402_v12  ;;  %914 = vmatmul.mubr.f32.vlgmr.msra.gmra.mrb[0].mxu0 %v310_v13 }
  0xc0   : > { %918 = vmatprep.mubr.msk.f32.mxu0 %vm1309_vm0, %v1308_v1  ;;  %923 = vmatprep.mubr.msk.f32.mxu1 %vm1309_vm0, %v1308_v1 }
 0x192   : > { %v501_v14 = vpop.f32.mrb[0].mxu1  ;;  %v393_v0 = vpop.f32.mrb[0].mxu0 }
 0x193   : > { %v503_v15 = vpop.f32.mrb[1].mxu1  ;;  %917 = vmatpush3.xpose.msra.mxu0 %v501_v14  ;;  %v915_v16 = vpop.f32.mrb[1].mxu0 }
 0x194   : > { %922 = vmatpush3.msra.mxu1 %v503_v15 }
 0x196   : > { %919 = vmatmul.mubr.f32.vlgmr.msra.gmra.mrb[2].mxu0 %v393_v0 }
 0x269   : > { %v573_v18 = vpop.f32.mrb[2].mxu0 }
 0x26a   : > { %v920_v19 = vpop.f32.mrb[3].mxu0  ;;  %v579_v20 = vsel %vm578_vm2, %v573_v18, -inf }
 0x26b   : > { %580 = vmax.xlane.f32.xlu0 %v579_v20 }
 0x2f8   : > { %v581_v23 = vpop.xlane.xlu0 %580 }
 0x2f9   : > { %v582_v24 = vmax.f32 %v577_v22, %v581_v23 }
 0x2fb   : > { %v583_v25 = vsub.f32 %v577_v22, %v582_v24  ;;  %684 = vst.msk [vmem:[#allocation3] sm:$0xff] %vm398_vm1, %v582_v24  ;;  %588 = vperm.xlu0 %1079, %v582_v24  }
 0x2fd   : > { %v584_v30 = vmul.f32 1.442695, %v583_v25 }
 0x37a   : > { %v589_v26 = vpop.permute.xlu0 %588 }
 0x37b   : > { %v591_v27 = vsub.f32 %v573_v18, %v589_v26 }
 0x37d   : > { %v592_v28 = vmul.f32 1.442695, %v591_v27 }
 0x37f   : > { %1081 = vpow2.f32 %v592_v28 }
 0x380   : > { %1083 = vpow2.f32 %v584_v30 }
 0x389   : > { %v1082_v1 = vpop.eup %1081 }
 0x38a   : > { %924 = vmatmul.mubr.msk.f32.vlgmr.msra.gmra.mrb[2].mxu1 %vm578_vm2, %v1082_v1  ;;  %v596_v29 = vsel %vm578_vm2, %v1082_v1, 0.0  ;;  %v1084_v31 = vpop.eup %1083 }
 0x38b   : > { %597 = vadd.xlane.f32.xlu1 %v596_v29  ;;  %v595_v33 = vmul.f32 %v1084_v31, %v594_v32 }
 0x39c   : > { %605 = vperm.xlu1 %1080, %v1084_v31  }
 0x418   : > { %v598_v34 = vpop.xlane.xlu1 %597 }
 0x419   : > { %v599_v35 = vadd.f32 %v598_v34, %v595_v33 }
 0x41b   : > { %601 = vst.msk [vmem:[#allocation4] sm:$0xff] %vm398_vm1, %v599_v35 }
 0x41c   : > { %v606_v40 = vpop.permute.xlu1 %605 }
 0x41d   : > { %v608_v41 = vmul.f32 0.0, %v606_v40 }
 0x422   : > { %v688_v36 = vld [vmem:[#allocation4] sm:$0xff] }
 0x423   : > { %1085 = vrcp.f32 %v688_v36 }
 0x42d   : > { %v1086_v37 = vpop.eup %1085 }
 0x42e   : > { %693 = vperm.xlu1 %1080, %v1086_v37  }
 0x45d   : > { %v678_v38 = vpop.f32.mrb[2].mxu1 }
 0x45e   : > { %v925_v39 = vpop.f32.mrb[3].mxu1  ;;  %v682_v42 = vadd.f32 %v678_v38, %v608_v41 }
 0x4ad   : > { %v694_v43 = vpop.permute.xlu1 %693 }
 0x4ae   : > { %v696_v44 = vmul.f32 %v694_v43, %v682_v42 }
 0x4b0   : > { %697 = vst [vmem:[%s305_s23] sm:$0xff] %v696_v44 }
 0x4b1   : > { %1216 = shalt.err (!%p1213_p7)
}
 0x4b2   : > { %s1217_s11 = scalar_lea.hbm %s1607_s6, 128  ;;  %s1221_s22 = scalar_lea.hbm %s1660_s4, 256 }
 0x4b3   : > { %p1218_p13 = scmp.ne.s32.totalorder %s1607_s6, %s1217_s11  ;;  %p1222_p2 = scmp.lt.u32.totalorder %s1607_s6, %s1660_s4 }
 0x4b4   : > { %p1223_p12 = scmp.lt.u32.totalorder %s1221_s22, %s1217_s11  ;;  %p1225_p1 = scmp.lt.u32.totalorder %s1217_s11, %s1607_s6 }
 0x4b5   : > { %p1219_p8 = pnand %p1218_p13, %p1684_p6 }
 0x4b6   : > { %p1224_p0 = por %p1223_p12, %p1222_p2 }
 0x4b7   : > { %p1220_p11 = pneg %p1219_p8 }
 0x4b8   : > { %p1226_p10 = por %p1225_p1, %p1224_p0 }
 0x4ba   : > { %p1227_p3 = pnand %p1226_p10, %p1220_p11 }
 0x4bc   : > { %1230 = shalt.err (!%p1227_p3)
}
 0x4bd   : > { %994 = dma.vmem_to_hbm [thread:$0]  (%p1684_p6), %s1609_s14, 128, %s1607_s6, %s699_s13  }
 0x4be PF: > { %s725_s25 = sand.u32 1, %s1277_s15   ;;  %p1685_p4 = scmp.ne.s32.totalorder %s1669_s24, 0 }
 0x4bf   : > { %p1686_p9 = scmp.ge.s32.totalorder %s1297_s20, 2  ;;  %s726_s12 = scalar_lea.sflag [#allocation8], %s725_s25 }
 0x4c1   : > { %p1011_p5 = pnand %p1686_p9, %p1685_p4 }
 0x4c3   : > { %1272 = dma.done.wait (!%p1011_p5), %s726_s12, 128  }
 0x4c4   : > { %1274 = vsyncadd (!%p1011_p5), %s726_s12, 4294967168  ;;  %s24_s20 = sadd.s32 1, %s1297_s20   ;;  %s1687_s29 = sld [smem:[#allocation20_spill]] }
 0x4c5   : > { %p21_p7 = scmp.ge.s32.totalorder %s24_s20, 4   ;;  %s1688_s15 = smov %s1281_s16 }
 0x4c6   : > { %s1689_s16 = smov %s1285_s17  ;;  %s1690_s17 = smov %s1478_s7 }
 0x4c7   : > { %s1691_s18 = smov %s1293_s19  ;;  %23 = sbr.rel (!%p21_p7) target bundleno = 12 (0xc), region = 110 }
 0x4ca   : > { %s1692_s19 = smov %s1687_s29 }
 0x4ce   :  { %731 = vsyncpa [#allocation7], 1 }
 0x4cf   :  { %733 = vsyncpa [#allocation7 + $0x1], 1 }
 0x4d0   :  { %734 = vsyncpa [#allocation10], 1 }
 0x4d1   :  { %736 = vsyncpa [#allocation10 + $0x1], 1 }
 0x4d2   :  { %737 = vsyncpa [#allocation13], 1 }
 0x4d3   :  { %738 = vsyncpa [#allocation8], 1 }
 0x4d4   :  { %740 = vsyncpa [#allocation8 + $0x1], 1 }

</bundles_post_ra>
